<compile_context>
chip_gen: v5e
topology: v5e:2x2
jax: 0.10.0
libtpu: 0.0.40
codegen_flags: <defaults>
</compile_context>

<pallas_src>
import jax
import jax.numpy as jnp
from jax.experimental import pallas as pl
from jax.experimental.pallas import tpu as pltpu

IN_DIM = 6
H1 = 24
H2 = 12
OUT_DIM = 4

DEFAULT_TB = 16384          # lane-axis batch tile (multiple of 128)
VMEM_LIMIT = 32 * 1024 * 1024


def policy_kernel(xt_ref, w1_ref, b1_ref, w2_ref, b2_ref, w3_ref, b3_ref, o_ref):
    xt = xt_ref[...]                                                     # (6, TB) bf16

    # All three matmuls: bf16 operands, f32 accumulation on the MXU.
    h1 = jnp.dot(w1_ref[...], xt, preferred_element_type=jnp.float32)   # (24, TB) f32
    h1 = jnp.maximum(h1 + b1_ref[...], 0.0)                             # ReLU

    h2 = jnp.dot(w2_ref[...], h1.astype(jnp.bfloat16),
                 preferred_element_type=jnp.float32)                    # (12, TB) f32
    h2 = jnp.maximum(h2 + b2_ref[...], 0.0)                             # ReLU

    logits = jnp.dot(w3_ref[...], h2.astype(jnp.bfloat16),
                     preferred_element_type=jnp.float32)                # (4, TB) f32
    logits = logits + b3_ref[...]

    # Numerically stable softmax over the 4 feature rows (sublane axis) via XLU
    # axis-0 reduces; exact reciprocal so each column sums to 1 within f32 rounding.
    m = jnp.max(logits, axis=0, keepdims=True)                          # (1, TB)
    e = jnp.exp(logits - m)                                             # (4, TB)
    s = jnp.sum(e, axis=0, keepdims=True)                               # (1, TB)
    o_ref[...] = e * pl.reciprocal(s)


def _bf16_params(params):
    w1, b1, w2, b2, w3, b3 = params
    return (w1.astype(jnp.bfloat16), b1.reshape(H1, 1).astype(jnp.float32),
            w2.astype(jnp.bfloat16), b2.reshape(H2, 1).astype(jnp.float32),
            w3.astype(jnp.bfloat16), b3.reshape(OUT_DIM, 1).astype(jnp.float32))


def policy_forward_feature_major(xt, params, *, tb=DEFAULT_TB):
    """Feature-major fast path.

    xt: (6, Bp) bfloat16 with Bp a multiple of 128 -> (4, Bp) float32 probabilities.
    Use this entry point when the caller already keeps activations feature-major;
    it performs no wrapper-side layout passes at all.
    """
    Bp = xt.shape[1]
    tb = max(128, min(tb, Bp))
    assert Bp % tb == 0 and tb % 128 == 0
    grid_b = Bp // tb

    w1, b1c, w2, b2c, w3, b3c = _bf16_params(params)

    # Weights/biases: constant index_map -> DMA'd once, VMEM-resident across steps.
    resident = lambda shape: pl.BlockSpec(shape, lambda i: (0, 0))

    return pl.pallas_call(
        policy_kernel,
        out_shape=jax.ShapeDtypeStruct((OUT_DIM, Bp), jnp.float32),
        grid=(grid_b,),
        in_specs=[
            pl.BlockSpec((IN_DIM, tb), lambda i: (0, i)),   # streamed bf16 x tile
            resident((H1, IN_DIM)),
            resident((H1, 1)),
            resident((H2, H1)),
            resident((H2, 1)),
            resident((OUT_DIM, H2)),
            resident((OUT_DIM, 1)),
        ],
        out_specs=pl.BlockSpec((OUT_DIM, tb), lambda i: (0, i)),
        compiler_params=pltpu.CompilerParams(
            dimension_semantics=("parallel",),              # megacore sharding on v7x
            vmem_limit_bytes=VMEM_LIMIT,                    # big tiles legal on v5e too
        ),
    )(xt, w1, b1c, w2, b2c, w3, b3c)


def policy_forward(x, params, *, tb=DEFAULT_TB):
    """PyTorch-layout wrapper: x (B, 6) float32 -> (B, 4) float32 probabilities."""
    B = x.shape[0]

    # Lane tile: multiple of 128, shrunk for small batches, capped at `tb`.
    tb = max(128, min(tb, pl.cdiv(B, 128) * 128))
    grid_b = pl.cdiv(B, tb)
    Bp = grid_b * tb

    # Layout plumbing (single fusible pad -> transpose -> bf16 chain; for zero
    # wrapper passes keep activations feature-major and call
    # policy_forward_feature_major directly).
    if Bp != B:
        x = jnp.pad(x, ((0, Bp - B), (0, 0)))
    xt = x.T.astype(jnp.bfloat16)                           # (6, Bp) bf16

    out_t = policy_forward_feature_major(xt, params, tb=tb)  # (4, Bp) f32

    # Back to (B, 4); padded columns hold softmax of bias-only logits (finite) and
    # are discarded here.
    return out_t.T[:B]


def init_params(key):
    """Deterministic init mimicking PyTorch nn.Linear defaults (weights (out, in))."""
    def linear(key, fan_in, fan_out):
        kw, kb = jax.random.split(key)
        bound = 1.0 / jnp.sqrt(fan_in)
        w = jax.random.uniform(kw, (fan_out, fan_in), jnp.float32, -bound, bound)
        b = jax.random.uniform(kb, (fan_out,), jnp.float32, -bound, bound)
        return w, b

    k1, k2, k3 = jax.random.split(key, 3)
    w1, b1 = linear(k1, IN_DIM, H1)
    w2, b2 = linear(k2, H1, H2)
    w3, b3 = linear(k3, H2, OUT_DIM)
    return (w1, b1, w2, b2, w3, b3)


def policy_ref(x, params):
    """Pure-JAX f32 reference for correctness checking (PyTorch semantics)."""
    w1, b1, w2, b2, w3, b3 = params
    h1 = jax.nn.relu(x @ w1.T + b1)
    h2 = jax.nn.relu(h1 @ w2.T + b2)
    return jax.nn.softmax(h2 @ w3.T + b3, axis=-1)


if __name__ == "__main__":
    key = jax.random.PRNGKey(0)
    kp, kx = jax.random.split(key)
    params = init_params(kp)

    # bf16 matmul inputs (f32 accumulation) -> ~1e-2-level tolerance vs f32 reference.
    TOL = 2e-2

    # Primary small check (single tile, B padded to 128 internally).
    B = 8
    x = jax.random.normal(kx, (B, IN_DIM), dtype=jnp.float32)
    out = jax.block_until_ready(policy_forward(x, params))
    ref = policy_ref(x, params)
    assert out.shape == (B, OUT_DIM)
    assert jnp.allclose(out, ref, atol=TOL, rtol=TOL), "mismatch vs reference (B=8)"
    # Exact reciprocal in the softmax -> rows sum to 1 within f32 rounding.
    assert jnp.allclose(jnp.sum(out, axis=-1), jnp.ones((B,)), atol=1e-3)

    # Multi-tile + padding path (grid_b > 1, B % tb != 0) to exercise the pipeline.
    B2 = 300
    x2 = jax.random.normal(jax.random.PRNGKey(1), (B2, IN_DIM), dtype=jnp.float32)
    out2 = jax.block_until_ready(policy_forward(x2, params, tb=128))
    ref2 = policy_ref(x2, params)
    assert out2.shape == (B2, OUT_DIM)
    assert jnp.allclose(out2, ref2, atol=TOL, rtol=TOL), "mismatch vs reference (B=300)"

    # Feature-major fast path (no wrapper layout passes).
    B3 = 256
    x3 = jax.random.normal(jax.random.PRNGKey(2), (B3, IN_DIM), dtype=jnp.float32)
    out3_t = jax.block_until_ready(
        policy_forward_feature_major(x3.T.astype(jnp.bfloat16), params, tb=128))
    ref3 = policy_ref(x3, params)
    assert out3_t.shape == (OUT_DIM, B3)
    assert jnp.allclose(out3_t.T, ref3, atol=TOL, rtol=TOL), "mismatch (feature-major)"

    print("KERNEL_OK")
</pallas_src>

<mosaic_0001>
module attributes {stable_mosaic.version = 11 : i64} {
  func.func @policy_kernel(%arg0: i32, %arg1: memref<6x128xbf16, #tpu.memory_space<vmem>>, %arg2: memref<24x6xbf16, #tpu.memory_space<vmem>>, %arg3: memref<24x1xf32, #tpu.memory_space<vmem>>, %arg4: memref<12x24xbf16, #tpu.memory_space<vmem>>, %arg5: memref<12x1xf32, #tpu.memory_space<vmem>>, %arg6: memref<4x12xbf16, #tpu.memory_space<vmem>>, %arg7: memref<4x1xf32, #tpu.memory_space<vmem>>, %arg8: memref<4x128xf32, #tpu.memory_space<vmem>>) attributes {dimension_semantics = [#tpu.dimension_semantics<parallel>], iteration_bounds = array<i64: 1>, scalar_prefetch = 0 : i64, scratch_operands = 0 : i64, tpu.core_type = #tpu.core_type<tc>, window_params = [{transform_indices = @transform_0, window_bounds = array<i64: 6, 128>}, {pipeline_mode = #tpu.pipeline_mode<synchronous>, transform_indices = @transform_1, window_bounds = array<i64: 24, 6>}, {pipeline_mode = #tpu.pipeline_mode<synchronous>, transform_indices = @transform_2, window_bounds = array<i64: 24, 1>}, {pipeline_mode = #tpu.pipeline_mode<synchronous>, transform_indices = @transform_3, window_bounds = array<i64: 12, 24>}, {pipeline_mode = #tpu.pipeline_mode<synchronous>, transform_indices = @transform_4, window_bounds = array<i64: 12, 1>}, {pipeline_mode = #tpu.pipeline_mode<synchronous>, transform_indices = @transform_5, window_bounds = array<i64: 4, 12>}, {pipeline_mode = #tpu.pipeline_mode<synchronous>, transform_indices = @transform_6, window_bounds = array<i64: 4, 1>}, {transform_indices = @transform_7, window_bounds = array<i64: 4, 128>}]} {
    %c0 = arith.constant 0 : index
    %c0_0 = arith.constant 0 : index
    %0 = vector.load %arg1[%c0, %c0_0] : memref<6x128xbf16, #tpu.memory_space<vmem>>, vector<6x128xbf16>
    %c0_1 = arith.constant 0 : index
    %c0_2 = arith.constant 0 : index
    %1 = vector.load %arg2[%c0_1, %c0_2] : memref<24x6xbf16, #tpu.memory_space<vmem>>, vector<24x6xbf16>
    %cst = arith.constant dense<0.000000e+00> : vector<24x128xf32>
    %2 = tpu.matmul %1, %0, %cst {dimension_numbers = #tpu.dot_dimension_numbers<[1], [0], [0], [1], [0, 0, 1, 1], [], []>} : vector<24x6xbf16>, vector<6x128xbf16>, vector<24x128xf32> -> vector<24x128xf32>
    %c0_3 = arith.constant 0 : index
    %c0_4 = arith.constant 0 : index
    %3 = vector.load %arg3[%c0_3, %c0_4] : memref<24x1xf32, #tpu.memory_space<vmem>>, vector<24x1xf32>
    %4 = vector.broadcast %3 : vector<24x1xf32> to vector<24x128xf32>
    %5 = arith.addf %2, %4 : vector<24x128xf32>
    %cst_5 = arith.constant 0.000000e+00 : f32
    %6 = vector.broadcast %cst_5 : f32 to vector<24x128xf32>
    %7 = arith.maximumf %5, %6 : vector<24x128xf32>
    %c0_6 = arith.constant 0 : index
    %c0_7 = arith.constant 0 : index
    %8 = vector.load %arg4[%c0_6, %c0_7] : memref<12x24xbf16, #tpu.memory_space<vmem>>, vector<12x24xbf16>
    %9 = arith.truncf %7 : vector<24x128xf32> to vector<24x128xbf16>
    %cst_8 = arith.constant dense<0.000000e+00> : vector<12x128xf32>
    %10 = tpu.matmul %8, %9, %cst_8 {dimension_numbers = #tpu.dot_dimension_numbers<[1], [0], [0], [1], [0, 0, 1, 1], [], []>} : vector<12x24xbf16>, vector<24x128xbf16>, vector<12x128xf32> -> vector<12x128xf32>
    %c0_9 = arith.constant 0 : index
    %c0_10 = arith.constant 0 : index
    %11 = vector.load %arg5[%c0_9, %c0_10] : memref<12x1xf32, #tpu.memory_space<vmem>>, vector<12x1xf32>
    %12 = vector.broadcast %11 : vector<12x1xf32> to vector<12x128xf32>
    %13 = arith.addf %10, %12 : vector<12x128xf32>
    %cst_11 = arith.constant 0.000000e+00 : f32
    %14 = vector.broadcast %cst_11 : f32 to vector<12x128xf32>
    %15 = arith.maximumf %13, %14 : vector<12x128xf32>
    %c0_12 = arith.constant 0 : index
    %c0_13 = arith.constant 0 : index
    %16 = vector.load %arg6[%c0_12, %c0_13] : memref<4x12xbf16, #tpu.memory_space<vmem>>, vector<4x12xbf16>
    %17 = arith.truncf %15 : vector<12x128xf32> to vector<12x128xbf16>
    %cst_14 = arith.constant dense<0.000000e+00> : vector<4x128xf32>
    %18 = tpu.matmul %16, %17, %cst_14 {dimension_numbers = #tpu.dot_dimension_numbers<[1], [0], [0], [1], [0, 0, 1, 1], [], []>} : vector<4x12xbf16>, vector<12x128xbf16>, vector<4x128xf32> -> vector<4x128xf32>
    %c0_15 = arith.constant 0 : index
    %c0_16 = arith.constant 0 : index
    %19 = vector.load %arg7[%c0_15, %c0_16] : memref<4x1xf32, #tpu.memory_space<vmem>>, vector<4x1xf32>
    %20 = vector.broadcast %19 : vector<4x1xf32> to vector<4x128xf32>
    %21 = arith.addf %18, %20 : vector<4x128xf32>
    %cst_17 = arith.constant dense<0xFF800000> : vector<128xf32>
    %22 = vector.multi_reduction <maximumf>, %21, %cst_17 [0] : vector<4x128xf32> to vector<128xf32>
    %23 = vector.shape_cast %22 : vector<128xf32> to vector<1x128xf32>
    %24 = vector.broadcast %23 : vector<1x128xf32> to vector<4x128xf32>
    %25 = arith.subf %21, %24 : vector<4x128xf32>
    %26 = math.exp %25 : vector<4x128xf32>
    %cst_18 = arith.constant dense<0.000000e+00> : vector<128xf32>
    %27 = vector.multi_reduction <add>, %26, %cst_18 [0] : vector<4x128xf32> to vector<128xf32>
    %28 = vector.shape_cast %27 : vector<128xf32> to vector<1x128xf32>
    %29 = tpu.reciprocal %28 : vector<1x128xf32> -> vector<1x128xf32>
    %30 = vector.broadcast %29 : vector<1x128xf32> to vector<4x128xf32>
    %31 = arith.mulf %26, %30 : vector<4x128xf32>
    %c0_19 = arith.constant 0 : index
    %c0_20 = arith.constant 0 : index
    %32 = vector.load %arg8[%c0_19, %c0_20] : memref<4x128xf32, #tpu.memory_space<vmem>>, vector<4x128xf32>
    tpu.vector_store %arg8[%c0_19, %c0_20], %31 {strides = array<i32>} : memref<4x128xf32, #tpu.memory_space<vmem>>, vector<4x128xf32>,
    return
  }
  func.func @transform_0(%arg0: i32) -> (i32, i32) {
    %c0_i32 = arith.constant 0 : i32
    %c0_i32_0 = arith.constant 0 : i32
    return %c0_i32, %arg0 : i32, i32
  }
  func.func @transform_1(%arg0: i32) -> (i32, i32) {
    %c0_i32 = arith.constant 0 : i32
    %c0_i32_0 = arith.constant 0 : i32
    %c0_i32_1 = arith.constant 0 : i32
    return %c0_i32, %c0_i32_0 : i32, i32
  }
  func.func @transform_2(%arg0: i32) -> (i32, i32) {
    %c0_i32 = arith.constant 0 : i32
    %c0_i32_0 = arith.constant 0 : i32
    %c0_i32_1 = arith.constant 0 : i32
    return %c0_i32, %c0_i32_0 : i32, i32
  }
  func.func @transform_3(%arg0: i32) -> (i32, i32) {
    %c0_i32 = arith.constant 0 : i32
    %c0_i32_0 = arith.constant 0 : i32
    %c0_i32_1 = arith.constant 0 : i32
    return %c0_i32, %c0_i32_0 : i32, i32
  }
  func.func @transform_4(%arg0: i32) -> (i32, i32) {
    %c0_i32 = arith.constant 0 : i32
    %c0_i32_0 = arith.constant 0 : i32
    %c0_i32_1 = arith.constant 0 : i32
    return %c0_i32, %c0_i32_0 : i32, i32
  }
  func.func @transform_5(%arg0: i32) -> (i32, i32) {
    %c0_i32 = arith.constant 0 : i32
    %c0_i32_0 = arith.constant 0 : i32
    %c0_i32_1 = arith.constant 0 : i32
    return %c0_i32, %c0_i32_0 : i32, i32
  }
  func.func @transform_6(%arg0: i32) -> (i32, i32) {
    %c0_i32 = arith.constant 0 : i32
    %c0_i32_0 = arith.constant 0 : i32
    %c0_i32_1 = arith.constant 0 : i32
    return %c0_i32, %c0_i32_0 : i32, i32
  }
  func.func @transform_7(%arg0: i32) -> (i32, i32) {
    %c0_i32 = arith.constant 0 : i32
    %c0_i32_0 = arith.constant 0 : i32
    return %c0_i32, %arg0 : i32, i32
  }
}

</mosaic_0001>

<bundles_post_ra>
// kernel: tpu_custom_call.1
= control target key start
LH: loop header
LB: loop body
LE: loop exit
PB: predicated region body
PF: predicated region fallthrough
CT: control target
= control target key end

     0   :  { %vm65_vm0 = vcmask 1042432   ;;  %v263_v4 = vmov 0   ;;  %vm58_vm1 = vcmask 48128   ;;  %s347_s0 = inlined_call_operand.vmem [shape: bf16[6,128], index: 0, kind: input, shape index: {}]   ;;  %s348_s1 = inlined_call_operand.vmem [shape: bf16[24,6], index: 1, kind: input, shape index: {}]   ;;  %s349_s2 = inlined_call_operand.vmem [shape: f32[24,1], index: 2, kind: input, shape index: {}]   ;;  %s350_s3 = inlined_call_operand.vmem [shape: bf16[12,24], index: 3, kind: input, shape index: {}]   ;;  %s351_s4 = inlined_call_operand.vmem [shape: f32[12,1], index: 4, kind: input, shape index: {}]   ;;  %s352_s5 = inlined_call_operand.vmem [shape: bf16[4,12], index: 5, kind: input, shape index: {}]   ;;  %s353_s6 = inlined_call_operand.vmem [shape: f32[4,1], index: 6, kind: input, shape index: {}]   ;;  %s354_s7 = inlined_call_operand.hbm [shape: f32[4,128], index: 7, kind: output, shape index: {}]  }
   0x1   :  { %v28_v0 = vld [vmem:[%s347_s0] sm:$0x7]  ;;  %v31_v3 = vld [vmem:[%s348_s1 + $0x8] sm:$0xf]  ;;  %230 = vset.pattern.permute.xlu0 %v263_v4  ;;  %v34_v5 = vld [vmem:[%s349_s2 + $0x10] sm:$0xff]  ;;  %231 = vset.pattern.permute.xlu1 %v263_v4 }
   0x2   :  { %v225_v1 = vld [vmem:[%s348_s1] sm:$0xff]  ;;  %v67_v2 = vsel %vm65_vm0, %v28_v0, 0  ;;  %v33_v6 = vld [vmem:[%s349_s2 + $0x8] sm:$0xff]  ;;  %v55_v7 = vunpack.c.l.b16 %v31_v3 }
   0x3   :  { %76 = vmatpush.bf16.msra.mxu0 %v67_v2  ;;  %227 = vmatpush.bf16.msra.mxu3 %v67_v2 }
   0x4   :  { %12 = vsyncpa [#allocation3], 0  ;;  %47 = vperm.xlu0 %230, %v34_v5   ;;  %42 = vperm.xlu1 %231, %v33_v6   ;;  %v57_v8 = vpack.c.b16 %v55_v7, %v55_v7  ;;  %v32_v9 = vld [vmem:[%s349_s2] sm:$0xff]  ;;  %v95_v11 = vld [vmem:[%s351_s4 + $0x8] sm:$0xf]  ;;  %vm115_vm2 = vcmask 1043456  }
   0x5   :  { %232 = vset.pattern.permute.xlu2 %v263_v4  ;;  %v94_v10 = vld [vmem:[%s351_s4] sm:$0xff]  ;;  %vm111_vm3 = vcmask 195584   ;;  %vm147_vm4 = vcmask 1045504   ;;  %vm143_vm5 = vcmask 97280   ;;  %s204_s22 = sshll.u32 %s354_s7, 4  ;;  %s205_s22 = int_to_ptr.hbm [resolvable:$true] %s204_s22 }
   0x6   :  { %217 = vmatmul.msk.bf16.vlgmr.msra.gmra.mxu0 %vm58_vm1, %v225_v1  ;;  %218 = vmatmul.msk.bf16.vlgmr.msra.gmra.mxu3 %vm58_vm1, %v57_v8  ;;  %v137_v12 = vld [vmem:[%s353_s6] sm:$0xf]  ;;  %v226_v29 = vld [vmem:[%s350_s3] sm:$0x30] }
   0x7   :  { %103 = vperm.xlu2 %232, %v95_v11   ;;  %v221_v28 = vld [vmem:[%s350_s3] sm:$0xf]  ;;  %s264_s3 = smov [#allocation2]  }
   0x8   :  { %v222_v31 = vor.u32 %v226_v29, %v221_v28  ;;  %v135_v42 = vld [vmem:[%s352_s5] sm:$0x3]  ;;  %s202_s5 = sshll.u32 %s264_s3, 4  ;;  %s203_s5 = int_to_ptr.vmem [resolvable:$true] %s202_s5 }
   0xc   :  { %37 = vperm.xlu0 %230, %v32_v9   ;;  %98 = vperm.xlu1 %231, %v94_v10  }
   0xf   :  { %140 = vperm.xlu2 %232, %v137_v12  }
  0x61   :  { %v104_v35 = vpop.permute.xlu2 %103 }
  0x69   :  { %v141_v43 = vpop.permute.xlu2 %140 }
  0x76   :  { %v48_v13 = vpop.permute.xlu0 %47  ;;  %v43_v15 = vpop.permute.xlu1 %42 }
  0x7e   :  { %v38_v17 = vpop.permute.xlu0 %37  ;;  %v99_v33 = vpop.permute.xlu1 %98 }
  0x83   :  { %v78_v14 = vpop.f32.mrf.mxu0 }
  0x84   :  { %v79_v22 = vadd.f32 %v78_v14, %v38_v17 }
  0x86   :  { %v87_v26 = vmax.f32 %v79_v22, 0.0 }
  0x89   :  { %v83_v16 = vpop.f32.mrf.mxu3 }
  0x8a   :  { %v84_v18 = vadd.f32 %v83_v16, %v48_v13 }
  0x8b   :  { %v80_v19 = vpop.f32.mrf.mxu0 }
  0x8c   :  { %v81_v20 = vadd.f32 %v80_v19, %v43_v15  ;;  %v89_v21 = vmax.f32 %v84_v18, 0.0 }
  0x8e   :  { %v93_v23 = vpack.c.bf16 %v89_v21, %v89_v21  ;;  %v88_v24 = vmax.f32 %v81_v20, 0.0 }
  0x90   :  { %v117_v25 = vsel %vm115_vm2, %v93_v23, 0  ;;  %v92_v30 = vpack.c.bf16 %v88_v24, %v87_v26 }
  0x91   :  { %v85_v27 = vpop.f32.mrf.mxu3  ;;  %125 = vmatpush.bf16.msra.mxu1 %v117_v25 }
  0x95   :  { %126 = vmatpush.bf16.msra.mxu1 %v92_v30 }
  0x98   :  { %223 = vmatmul.msk.bf16.vlgmr.msra.gmra.mxu1 %vm111_vm3, %v222_v31 }
 0x115   :  { %v128_v32 = vpop.f32.mrf.mxu1 }
 0x116   :  { %v129_v34 = vadd.f32 %v128_v32, %v99_v33 }
 0x118   :  { %v133_v38 = vmax.f32 %v129_v34, 0.0 }
 0x11d   :  { %v130_v36 = vpop.f32.mrf.mxu1 }
 0x11e   :  { %v131_v37 = vadd.f32 %v130_v36, %v104_v35 }
 0x120   :  { %v134_v39 = vmax.f32 %v131_v37, 0.0 }
 0x122   :  { %v136_v40 = vpack.c.bf16 %v134_v39, %v133_v38 }
 0x124   :  { %v149_v41 = vsel %vm147_vm4, %v136_v40, 0 }
 0x125   :  { %158 = vmatpush.bf16.msra.mxu2 %v149_v41 }
 0x128   :  { %224 = vmatmul.msk.bf16.vlgmr.msra.gmra.mxu2 %vm143_vm5, %v135_v42 }
 0x1ab   :  { %v160_v44 = vpop.f32.mrf.mxu2 }
 0x1ac   :  { %v161_v45 = vadd.f32 %v160_v44, %v141_v43 }
 0x1ae   :  { %v164_v46 = vsel %vm115_vm2, %v161_v45, -inf }
 0x1af   :  { %v165_v47 = vrot.slane %v164_v46, 4 }
 0x1b1   :  { %v166_v48 = vmax.f32 %v164_v46, %v165_v47 }
 0x1b3   :  { %v167_v49 = vrot.slane %v166_v48, 2  ;;  %v162_v50 = vpop.f32.mrf.mxu2 }
 0x1b5   :  { %v168_v51 = vmax.f32 %v166_v48, %v167_v49 }
 0x1b7   :  { %v169_v52 = vrot.slane %v168_v51, 1 }
 0x1b9   :  { %v170_v53 = vmax.f32 %v168_v51, %v169_v52 }
 0x1bb   :  { %v171_v54 = vsub.f32 %v161_v45, %v170_v53 }
 0x1bd   :  { %v172_v55 = vmul.f32 1.442695, %v171_v54 }
 0x1bf   :  { %233 = vpow2.f32 %v172_v55 }
 0x1c5   :  { %v234_v56 = vpop.eup %233 }
 0x1c6   :  { %v174_v57 = vsel %vm115_vm2, %v234_v56, 0.0 }
 0x1c7   :  { %v175_v58 = vrot.slane %v174_v57, 4 }
 0x1c9   :  { %v176_v59 = vadd.f32 %v175_v58, %v174_v57 }
 0x1cb   :  { %v177_v60 = vrot.slane %v176_v59, 2 }
 0x1cd   :  { %v178_v61 = vadd.f32 %v177_v60, %v176_v59 }
 0x1cf   :  { %v179_v62 = vrot.slane %v178_v61, 1 }
 0x1d1   :  { %v180_v63 = vadd.f32 %v179_v62, %v178_v61 }
 0x1d3   :  { %235 = vrcp.f32 %v180_v63  ;;  %v192_v3 = vand.u32 2147483648, %v180_v63  ;;  %v190_v5 = vand.u32 2147483647, %v180_v63  ;;  %vm186_vm7 = vweird.f32 %v180_v63 }
 0x1d5   :  { %v193_v7 = vor.u32 1.1754944e-38, %v192_v3  ;;  %vm191_vm9 = vcmp.eq.f32.partialorder %v190_v5, 8.507059e+37 }
 0x1d9   :  { %v236_v0 = vpop.eup %235 }
 0x1da   :  { %v182_v1 = vmul.f32 %v236_v0, %v180_v63  ;;  %vm187_vm6 = vweird.f32 %v236_v0 }
 0x1db   :  { %vm188_vm8 = vmor %vm186_vm7, %vm187_vm6 }
 0x1dc   :  { %v183_v2 = vsub.f32 1.0, %v182_v1 }
 0x1de   :  { %v184_v4 = vmul.f32 %v236_v0, %v183_v2 }
 0x1e0   :  { %v185_v6 = vadd.f32 %v236_v0, %v184_v4 }
 0x1e2   :  { %v189_v8 = vsel %vm188_vm8, %v236_v0, %v185_v6 }
 0x1e3   :  { %v194_v9 = vsel %vm191_vm9, %v193_v7, %v189_v8 }
 0x1e4   :  { %v195_v10 = vmul.f32 %v234_v56, %v194_v9 }
 0x1e6   :  { %196 = vst [vmem:[#allocation2] sm:$0xf] %v195_v10 }
 0x1e7   :  { %207 = dma.vmem_to_hbm [thread:$0]  %s203_s5, 64, %s205_s22, [#allocation3]  }
 0x1e8   :  { %261 = dma.done.wait [#allocation3], 64  }
 0x1e9   :  { %262 = vsyncadd [#allocation3], 4294967232 }
 0x1ea   :  { %212 = vsyncpa [#allocation3], 1 }

</bundles_post_ra>
